<compile_context>
chip_gen: v7x
topology: tpu7x:2x2x1
jax: 0.10.0
libtpu: 0.0.40
codegen_flags: <defaults>
</compile_context>

<pallas_src>
import jax
import jax.numpy as jnp
from jax.experimental import pallas as pl
from jax.experimental.pallas import tpu as pltpu

# Layer (fan_in, fan_out) pairs, matching nn.Linear(2,5), 3x nn.Linear(5,5), nn.Linear(5,2).
DIMS = [(2, 5), (5, 5), (5, 5), (5, 5), (5, 2)]
LANE = 128        # lane width of a vreg / last-dim tile
SUB = 8           # sublane count of a f32 vreg; also rows-per-layer in the weight slab
MAX_TILE_B = 512  # batch tile cap (256 KiB per f32 block -> safe on v5e/v6e/v7x VMEM)


def mlp_kernel(x_ref, w_ref, b_ref, o_ref):
    """x_ref: (TILE_B, 128) activations (lanes >= 2 are zero).
    w_ref: (40, 128) weight slab; layer l's weight row k lives at sublane 8*l + k,
           lanes [0, fan_out), zeros elsewhere.
    b_ref: (8, 128) bias slab; layer l's bias at sublane l, lanes [0, fan_out).
    o_ref: (TILE_B, 128) output; only lanes [0, 2) are meaningful."""
    h = x_ref[...]
    n_layers = len(DIMS)
    for l, (fan_in, fan_out) in enumerate(DIMS):
        # VPU multiply-accumulate over fan_in (statically unrolled, 2..5 terms).
        # (TILE_B, 1) * (1, 128) broadcasts; zero-padded weight lanes keep padding at 0.
        acc = h[:, 0:1] * w_ref[SUB * l : SUB * l + 1, :]
        for k in range(1, fan_in):
            acc = acc + h[:, k : k + 1] * w_ref[SUB * l + k : SUB * l + k + 1, :]
        acc = acc + b_ref[l : l + 1, :]
        if l < n_layers - 1:
            acc = jnp.maximum(acc, 0.0)
        h = acc
    o_ref[...] = h


def pack_params(params):
    """Pack per-layer (W, b) (W shaped (in, out)) into lane/sublane-padded slabs."""
    w_slab = jnp.zeros((SUB * len(DIMS), LANE), jnp.float32)
    b_slab = jnp.zeros((SUB, LANE), jnp.float32)
    for l, (W, b) in enumerate(params):
        fan_in, fan_out = W.shape
        w_slab = w_slab.at[SUB * l : SUB * l + fan_in, :fan_out].set(W)
        b_slab = b_slab.at[l, :fan_out].set(jnp.reshape(b, (-1,)))
    return w_slab, b_slab


def net_forward(x, w_slab, b_slab):
    """x: (B, 2) f32. Returns (B, 2) f32, matching PyTorch Net.forward."""
    B, in_dim = x.shape
    out_dim = DIMS[-1][1]

    # Pad batch to a multiple of the tile, features to a full 128-lane tile.
    b_pad = -(-B // SUB) * SUB
    tile_b = min(b_pad, MAX_TILE_B)
    b_pad = -(-b_pad // tile_b) * tile_b
    x_pad = jnp.zeros((b_pad, LANE), jnp.float32).at[:B, :in_dim].set(x)

    grid = (b_pad // tile_b,)
    out_padded = pl.pallas_call(
        mlp_kernel,
        out_shape=jax.ShapeDtypeStruct((b_pad, LANE), jnp.float32),
        grid=grid,
        in_specs=[
            pl.BlockSpec((tile_b, LANE), lambda i: (i, 0)),
            # Weight/bias slabs: same block every grid step -> DMA'd once, VMEM-resident.
            pl.BlockSpec((SUB * len(DIMS), LANE), lambda i: (0, 0)),
            pl.BlockSpec((SUB, LANE), lambda i: (0, 0)),
        ],
        out_specs=pl.BlockSpec((tile_b, LANE), lambda i: (i, 0)),
        compiler_params=pltpu.CompilerParams(
            dimension_semantics=("parallel",)),
    )(x_pad, w_slab, b_slab)
    return out_padded[:B, :out_dim]


def init_params(key):
    """Deterministic init matching nn.Linear shapes; W stored as (in, out)."""
    params = []
    for fan_in, fan_out in DIMS:
        kw, kb, key = jax.random.split(key, 3)
        bound = 1.0 / (fan_in ** 0.5)
        W = jax.random.uniform(kw, (fan_in, fan_out), jnp.float32, -bound, bound)
        b = jax.random.uniform(kb, (1, fan_out), jnp.float32, -bound, bound)
        params.append((W, b))
    return params


def reference_forward(x, params):
    h = x
    for i, (W, b) in enumerate(params):
        h = h @ W + b
        if i < len(params) - 1:
            h = jnp.maximum(h, 0.0)
    return h


if __name__ == "__main__":
    key = jax.random.PRNGKey(0)
    kx, kp = jax.random.split(key)

    batch = 8
    x = jax.random.normal(kx, (batch, 2), dtype=jnp.float32)
    params = init_params(kp)
    w_slab, b_slab = pack_params(params)

    out = net_forward(x, w_slab, b_slab)
    out = jax.block_until_ready(out)

    ref = reference_forward(x, params)
    assert out.shape == (batch, 2)
    assert jnp.allclose(out, ref, atol=1e-5, rtol=1e-5)

    print("KERNEL_OK")
</pallas_src>

<mosaic_0001>
module attributes {stable_mosaic.version = 11 : i64} {
  func.func @mlp_kernel(%arg0: i32, %arg1: memref<8x128xf32, #tpu.memory_space<vmem>>, %arg2: memref<40x128xf32, #tpu.memory_space<vmem>>, %arg3: memref<8x128xf32, #tpu.memory_space<vmem>>, %arg4: memref<8x128xf32, #tpu.memory_space<vmem>>) attributes {dimension_semantics = [#tpu.dimension_semantics<parallel>], iteration_bounds = array<i64: 1>, scalar_prefetch = 0 : i64, scratch_operands = 0 : i64, tpu.core_type = #tpu.core_type<tc>, window_params = [{transform_indices = @transform_0, window_bounds = array<i64: 8, 128>}, {pipeline_mode = #tpu.pipeline_mode<synchronous>, transform_indices = @transform_1, window_bounds = array<i64: 40, 128>}, {pipeline_mode = #tpu.pipeline_mode<synchronous>, transform_indices = @transform_2, window_bounds = array<i64: 8, 128>}, {transform_indices = @transform_3, window_bounds = array<i64: 8, 128>}]} {
    %c0 = arith.constant 0 : index
    %c0_0 = arith.constant 0 : index
    %0 = vector.load %arg1[%c0, %c0_0] : memref<8x128xf32, #tpu.memory_space<vmem>>, vector<8x128xf32>
    %1 = vector.extract_strided_slice %0 {offsets = [0, 0], sizes = [8, 1], strides = [1, 1]} : vector<8x128xf32> to vector<8x1xf32>
    %c0_1 = arith.constant 0 : index
    %c0_2 = arith.constant 0 : index
    %2 = vector.load %arg2[%c0_1, %c0_2] : memref<40x128xf32, #tpu.memory_space<vmem>>, vector<1x128xf32>
    %3 = vector.broadcast %1 : vector<8x1xf32> to vector<8x128xf32>
    %4 = vector.broadcast %2 : vector<1x128xf32> to vector<8x128xf32>
    %5 = arith.mulf %3, %4 : vector<8x128xf32>
    %6 = vector.extract_strided_slice %0 {offsets = [0, 1], sizes = [8, 1], strides = [1, 1]} : vector<8x128xf32> to vector<8x1xf32>
    %c1 = arith.constant 1 : index
    %c0_3 = arith.constant 0 : index
    %7 = vector.load %arg2[%c1, %c0_3] : memref<40x128xf32, #tpu.memory_space<vmem>>, vector<1x128xf32>
    %8 = vector.broadcast %6 : vector<8x1xf32> to vector<8x128xf32>
    %9 = vector.broadcast %7 : vector<1x128xf32> to vector<8x128xf32>
    %10 = arith.mulf %8, %9 : vector<8x128xf32>
    %11 = arith.addf %5, %10 : vector<8x128xf32>
    %c0_4 = arith.constant 0 : index
    %c0_5 = arith.constant 0 : index
    %12 = vector.load %arg3[%c0_4, %c0_5] : memref<8x128xf32, #tpu.memory_space<vmem>>, vector<1x128xf32>
    %13 = vector.broadcast %12 : vector<1x128xf32> to vector<8x128xf32>
    %14 = arith.addf %11, %13 : vector<8x128xf32>
    %cst = arith.constant 0.000000e+00 : f32
    %15 = vector.broadcast %cst : f32 to vector<8x128xf32>
    %16 = arith.maximumf %14, %15 : vector<8x128xf32>
    %17 = vector.extract_strided_slice %16 {offsets = [0, 0], sizes = [8, 1], strides = [1, 1]} : vector<8x128xf32> to vector<8x1xf32>
    %c8 = arith.constant 8 : index
    %c0_6 = arith.constant 0 : index
    %18 = vector.load %arg2[%c8, %c0_6] : memref<40x128xf32, #tpu.memory_space<vmem>>, vector<1x128xf32>
    %19 = vector.broadcast %17 : vector<8x1xf32> to vector<8x128xf32>
    %20 = vector.broadcast %18 : vector<1x128xf32> to vector<8x128xf32>
    %21 = arith.mulf %19, %20 : vector<8x128xf32>
    %22 = vector.extract_strided_slice %16 {offsets = [0, 1], sizes = [8, 1], strides = [1, 1]} : vector<8x128xf32> to vector<8x1xf32>
    %c9 = arith.constant 9 : index
    %c0_7 = arith.constant 0 : index
    %23 = vector.load %arg2[%c9, %c0_7] : memref<40x128xf32, #tpu.memory_space<vmem>>, vector<1x128xf32>
    %24 = vector.broadcast %22 : vector<8x1xf32> to vector<8x128xf32>
    %25 = vector.broadcast %23 : vector<1x128xf32> to vector<8x128xf32>
    %26 = arith.mulf %24, %25 : vector<8x128xf32>
    %27 = arith.addf %21, %26 : vector<8x128xf32>
    %28 = vector.extract_strided_slice %16 {offsets = [0, 2], sizes = [8, 1], strides = [1, 1]} : vector<8x128xf32> to vector<8x1xf32>
    %c10 = arith.constant 10 : index
    %c0_8 = arith.constant 0 : index
    %29 = vector.load %arg2[%c10, %c0_8] : memref<40x128xf32, #tpu.memory_space<vmem>>, vector<1x128xf32>
    %30 = vector.broadcast %28 : vector<8x1xf32> to vector<8x128xf32>
    %31 = vector.broadcast %29 : vector<1x128xf32> to vector<8x128xf32>
    %32 = arith.mulf %30, %31 : vector<8x128xf32>
    %33 = arith.addf %27, %32 : vector<8x128xf32>
    %34 = vector.extract_strided_slice %16 {offsets = [0, 3], sizes = [8, 1], strides = [1, 1]} : vector<8x128xf32> to vector<8x1xf32>
    %c11 = arith.constant 11 : index
    %c0_9 = arith.constant 0 : index
    %35 = vector.load %arg2[%c11, %c0_9] : memref<40x128xf32, #tpu.memory_space<vmem>>, vector<1x128xf32>
    %36 = vector.broadcast %34 : vector<8x1xf32> to vector<8x128xf32>
    %37 = vector.broadcast %35 : vector<1x128xf32> to vector<8x128xf32>
    %38 = arith.mulf %36, %37 : vector<8x128xf32>
    %39 = arith.addf %33, %38 : vector<8x128xf32>
    %40 = vector.extract_strided_slice %16 {offsets = [0, 4], sizes = [8, 1], strides = [1, 1]} : vector<8x128xf32> to vector<8x1xf32>
    %c12 = arith.constant 12 : index
    %c0_10 = arith.constant 0 : index
    %41 = vector.load %arg2[%c12, %c0_10] : memref<40x128xf32, #tpu.memory_space<vmem>>, vector<1x128xf32>
    %42 = vector.broadcast %40 : vector<8x1xf32> to vector<8x128xf32>
    %43 = vector.broadcast %41 : vector<1x128xf32> to vector<8x128xf32>
    %44 = arith.mulf %42, %43 : vector<8x128xf32>
    %45 = arith.addf %39, %44 : vector<8x128xf32>
    %c1_11 = arith.constant 1 : index
    %c0_12 = arith.constant 0 : index
    %46 = vector.load %arg3[%c1_11, %c0_12] : memref<8x128xf32, #tpu.memory_space<vmem>>, vector<1x128xf32>
    %47 = vector.broadcast %46 : vector<1x128xf32> to vector<8x128xf32>
    %48 = arith.addf %45, %47 : vector<8x128xf32>
    %cst_13 = arith.constant 0.000000e+00 : f32
    %49 = vector.broadcast %cst_13 : f32 to vector<8x128xf32>
    %50 = arith.maximumf %48, %49 : vector<8x128xf32>
    %51 = vector.extract_strided_slice %50 {offsets = [0, 0], sizes = [8, 1], strides = [1, 1]} : vector<8x128xf32> to vector<8x1xf32>
    %c16 = arith.constant 16 : index
    %c0_14 = arith.constant 0 : index
    %52 = vector.load %arg2[%c16, %c0_14] : memref<40x128xf32, #tpu.memory_space<vmem>>, vector<1x128xf32>
    %53 = vector.broadcast %51 : vector<8x1xf32> to vector<8x128xf32>
    %54 = vector.broadcast %52 : vector<1x128xf32> to vector<8x128xf32>
    %55 = arith.mulf %53, %54 : vector<8x128xf32>
    %56 = vector.extract_strided_slice %50 {offsets = [0, 1], sizes = [8, 1], strides = [1, 1]} : vector<8x128xf32> to vector<8x1xf32>
    %c17 = arith.constant 17 : index
    %c0_15 = arith.constant 0 : index
    %57 = vector.load %arg2[%c17, %c0_15] : memref<40x128xf32, #tpu.memory_space<vmem>>, vector<1x128xf32>
    %58 = vector.broadcast %56 : vector<8x1xf32> to vector<8x128xf32>
    %59 = vector.broadcast %57 : vector<1x128xf32> to vector<8x128xf32>
    %60 = arith.mulf %58, %59 : vector<8x128xf32>
    %61 = arith.addf %55, %60 : vector<8x128xf32>
    %62 = vector.extract_strided_slice %50 {offsets = [0, 2], sizes = [8, 1], strides = [1, 1]} : vector<8x128xf32> to vector<8x1xf32>
    %c18 = arith.constant 18 : index
    %c0_16 = arith.constant 0 : index
    %63 = vector.load %arg2[%c18, %c0_16] : memref<40x128xf32, #tpu.memory_space<vmem>>, vector<1x128xf32>
    %64 = vector.broadcast %62 : vector<8x1xf32> to vector<8x128xf32>
    %65 = vector.broadcast %63 : vector<1x128xf32> to vector<8x128xf32>
    %66 = arith.mulf %64, %65 : vector<8x128xf32>
    %67 = arith.addf %61, %66 : vector<8x128xf32>
    %68 = vector.extract_strided_slice %50 {offsets = [0, 3], sizes = [8, 1], strides = [1, 1]} : vector<8x128xf32> to vector<8x1xf32>
    %c19 = arith.constant 19 : index
    %c0_17 = arith.constant 0 : index
    %69 = vector.load %arg2[%c19, %c0_17] : memref<40x128xf32, #tpu.memory_space<vmem>>, vector<1x128xf32>
    %70 = vector.broadcast %68 : vector<8x1xf32> to vector<8x128xf32>
    %71 = vector.broadcast %69 : vector<1x128xf32> to vector<8x128xf32>
    %72 = arith.mulf %70, %71 : vector<8x128xf32>
    %73 = arith.addf %67, %72 : vector<8x128xf32>
    %74 = vector.extract_strided_slice %50 {offsets = [0, 4], sizes = [8, 1], strides = [1, 1]} : vector<8x128xf32> to vector<8x1xf32>
    %c20 = arith.constant 20 : index
    %c0_18 = arith.constant 0 : index
    %75 = vector.load %arg2[%c20, %c0_18] : memref<40x128xf32, #tpu.memory_space<vmem>>, vector<1x128xf32>
    %76 = vector.broadcast %74 : vector<8x1xf32> to vector<8x128xf32>
    %77 = vector.broadcast %75 : vector<1x128xf32> to vector<8x128xf32>
    %78 = arith.mulf %76, %77 : vector<8x128xf32>
    %79 = arith.addf %73, %78 : vector<8x128xf32>
    %c2 = arith.constant 2 : index
    %c0_19 = arith.constant 0 : index
    %80 = vector.load %arg3[%c2, %c0_19] : memref<8x128xf32, #tpu.memory_space<vmem>>, vector<1x128xf32>
    %81 = vector.broadcast %80 : vector<1x128xf32> to vector<8x128xf32>
    %82 = arith.addf %79, %81 : vector<8x128xf32>
    %cst_20 = arith.constant 0.000000e+00 : f32
    %83 = vector.broadcast %cst_20 : f32 to vector<8x128xf32>
    %84 = arith.maximumf %82, %83 : vector<8x128xf32>
    %85 = vector.extract_strided_slice %84 {offsets = [0, 0], sizes = [8, 1], strides = [1, 1]} : vector<8x128xf32> to vector<8x1xf32>
    %c24 = arith.constant 24 : index
    %c0_21 = arith.constant 0 : index
    %86 = vector.load %arg2[%c24, %c0_21] : memref<40x128xf32, #tpu.memory_space<vmem>>, vector<1x128xf32>
    %87 = vector.broadcast %85 : vector<8x1xf32> to vector<8x128xf32>
    %88 = vector.broadcast %86 : vector<1x128xf32> to vector<8x128xf32>
    %89 = arith.mulf %87, %88 : vector<8x128xf32>
    %90 = vector.extract_strided_slice %84 {offsets = [0, 1], sizes = [8, 1], strides = [1, 1]} : vector<8x128xf32> to vector<8x1xf32>
    %c25 = arith.constant 25 : index
    %c0_22 = arith.constant 0 : index
    %91 = vector.load %arg2[%c25, %c0_22] : memref<40x128xf32, #tpu.memory_space<vmem>>, vector<1x128xf32>
    %92 = vector.broadcast %90 : vector<8x1xf32> to vector<8x128xf32>
    %93 = vector.broadcast %91 : vector<1x128xf32> to vector<8x128xf32>
    %94 = arith.mulf %92, %93 : vector<8x128xf32>
    %95 = arith.addf %89, %94 : vector<8x128xf32>
    %96 = vector.extract_strided_slice %84 {offsets = [0, 2], sizes = [8, 1], strides = [1, 1]} : vector<8x128xf32> to vector<8x1xf32>
    %c26 = arith.constant 26 : index
    %c0_23 = arith.constant 0 : index
    %97 = vector.load %arg2[%c26, %c0_23] : memref<40x128xf32, #tpu.memory_space<vmem>>, vector<1x128xf32>
    %98 = vector.broadcast %96 : vector<8x1xf32> to vector<8x128xf32>
    %99 = vector.broadcast %97 : vector<1x128xf32> to vector<8x128xf32>
    %100 = arith.mulf %98, %99 : vector<8x128xf32>
    %101 = arith.addf %95, %100 : vector<8x128xf32>
    %102 = vector.extract_strided_slice %84 {offsets = [0, 3], sizes = [8, 1], strides = [1, 1]} : vector<8x128xf32> to vector<8x1xf32>
    %c27 = arith.constant 27 : index
    %c0_24 = arith.constant 0 : index
    %103 = vector.load %arg2[%c27, %c0_24] : memref<40x128xf32, #tpu.memory_space<vmem>>, vector<1x128xf32>
    %104 = vector.broadcast %102 : vector<8x1xf32> to vector<8x128xf32>
    %105 = vector.broadcast %103 : vector<1x128xf32> to vector<8x128xf32>
    %106 = arith.mulf %104, %105 : vector<8x128xf32>
    %107 = arith.addf %101, %106 : vector<8x128xf32>
    %108 = vector.extract_strided_slice %84 {offsets = [0, 4], sizes = [8, 1], strides = [1, 1]} : vector<8x128xf32> to vector<8x1xf32>
    %c28 = arith.constant 28 : index
    %c0_25 = arith.constant 0 : index
    %109 = vector.load %arg2[%c28, %c0_25] : memref<40x128xf32, #tpu.memory_space<vmem>>, vector<1x128xf32>
    %110 = vector.broadcast %108 : vector<8x1xf32> to vector<8x128xf32>
    %111 = vector.broadcast %109 : vector<1x128xf32> to vector<8x128xf32>
    %112 = arith.mulf %110, %111 : vector<8x128xf32>
    %113 = arith.addf %107, %112 : vector<8x128xf32>
    %c3 = arith.constant 3 : index
    %c0_26 = arith.constant 0 : index
    %114 = vector.load %arg3[%c3, %c0_26] : memref<8x128xf32, #tpu.memory_space<vmem>>, vector<1x128xf32>
    %115 = vector.broadcast %114 : vector<1x128xf32> to vector<8x128xf32>
    %116 = arith.addf %113, %115 : vector<8x128xf32>
    %cst_27 = arith.constant 0.000000e+00 : f32
    %117 = vector.broadcast %cst_27 : f32 to vector<8x128xf32>
    %118 = arith.maximumf %116, %117 : vector<8x128xf32>
    %119 = vector.extract_strided_slice %118 {offsets = [0, 0], sizes = [8, 1], strides = [1, 1]} : vector<8x128xf32> to vector<8x1xf32>
    %c32 = arith.constant 32 : index
    %c0_28 = arith.constant 0 : index
    %120 = vector.load %arg2[%c32, %c0_28] : memref<40x128xf32, #tpu.memory_space<vmem>>, vector<1x128xf32>
    %121 = vector.broadcast %119 : vector<8x1xf32> to vector<8x128xf32>
    %122 = vector.broadcast %120 : vector<1x128xf32> to vector<8x128xf32>
    %123 = arith.mulf %121, %122 : vector<8x128xf32>
    %124 = vector.extract_strided_slice %118 {offsets = [0, 1], sizes = [8, 1], strides = [1, 1]} : vector<8x128xf32> to vector<8x1xf32>
    %c33 = arith.constant 33 : index
    %c0_29 = arith.constant 0 : index
    %125 = vector.load %arg2[%c33, %c0_29] : memref<40x128xf32, #tpu.memory_space<vmem>>, vector<1x128xf32>
    %126 = vector.broadcast %124 : vector<8x1xf32> to vector<8x128xf32>
    %127 = vector.broadcast %125 : vector<1x128xf32> to vector<8x128xf32>
    %128 = arith.mulf %126, %127 : vector<8x128xf32>
    %129 = arith.addf %123, %128 : vector<8x128xf32>
    %130 = vector.extract_strided_slice %118 {offsets = [0, 2], sizes = [8, 1], strides = [1, 1]} : vector<8x128xf32> to vector<8x1xf32>
    %c34 = arith.constant 34 : index
    %c0_30 = arith.constant 0 : index
    %131 = vector.load %arg2[%c34, %c0_30] : memref<40x128xf32, #tpu.memory_space<vmem>>, vector<1x128xf32>
    %132 = vector.broadcast %130 : vector<8x1xf32> to vector<8x128xf32>
    %133 = vector.broadcast %131 : vector<1x128xf32> to vector<8x128xf32>
    %134 = arith.mulf %132, %133 : vector<8x128xf32>
    %135 = arith.addf %129, %134 : vector<8x128xf32>
    %136 = vector.extract_strided_slice %118 {offsets = [0, 3], sizes = [8, 1], strides = [1, 1]} : vector<8x128xf32> to vector<8x1xf32>
    %c35 = arith.constant 35 : index
    %c0_31 = arith.constant 0 : index
    %137 = vector.load %arg2[%c35, %c0_31] : memref<40x128xf32, #tpu.memory_space<vmem>>, vector<1x128xf32>
    %138 = vector.broadcast %136 : vector<8x1xf32> to vector<8x128xf32>
    %139 = vector.broadcast %137 : vector<1x128xf32> to vector<8x128xf32>
    %140 = arith.mulf %138, %139 : vector<8x128xf32>
    %141 = arith.addf %135, %140 : vector<8x128xf32>
    %142 = vector.extract_strided_slice %118 {offsets = [0, 4], sizes = [8, 1], strides = [1, 1]} : vector<8x128xf32> to vector<8x1xf32>
    %c36 = arith.constant 36 : index
    %c0_32 = arith.constant 0 : index
    %143 = vector.load %arg2[%c36, %c0_32] : memref<40x128xf32, #tpu.memory_space<vmem>>, vector<1x128xf32>
    %144 = vector.broadcast %142 : vector<8x1xf32> to vector<8x128xf32>
    %145 = vector.broadcast %143 : vector<1x128xf32> to vector<8x128xf32>
    %146 = arith.mulf %144, %145 : vector<8x128xf32>
    %147 = arith.addf %141, %146 : vector<8x128xf32>
    %c4 = arith.constant 4 : index
    %c0_33 = arith.constant 0 : index
    %148 = vector.load %arg3[%c4, %c0_33] : memref<8x128xf32, #tpu.memory_space<vmem>>, vector<1x128xf32>
    %149 = vector.broadcast %148 : vector<1x128xf32> to vector<8x128xf32>
    %150 = arith.addf %147, %149 : vector<8x128xf32>
    %c0_34 = arith.constant 0 : index
    %c0_35 = arith.constant 0 : index
    %151 = vector.load %arg4[%c0_34, %c0_35] : memref<8x128xf32, #tpu.memory_space<vmem>>, vector<8x128xf32>
    tpu.vector_store %arg4[%c0_34, %c0_35], %150 {strides = array<i32>} : memref<8x128xf32, #tpu.memory_space<vmem>>, vector<8x128xf32>,
    return
  }
  func.func @transform_0(%arg0: i32) -> (i32, i32) {
    %c0_i32 = arith.constant 0 : i32
    %c0_i32_0 = arith.constant 0 : i32
    return %arg0, %c0_i32 : i32, i32
  }
  func.func @transform_1(%arg0: i32) -> (i32, i32) {
    %c0_i32 = arith.constant 0 : i32
    %c0_i32_0 = arith.constant 0 : i32
    %c0_i32_1 = arith.constant 0 : i32
    return %c0_i32, %c0_i32_0 : i32, i32
  }
  func.func @transform_2(%arg0: i32) -> (i32, i32) {
    %c0_i32 = arith.constant 0 : i32
    %c0_i32_0 = arith.constant 0 : i32
    %c0_i32_1 = arith.constant 0 : i32
    return %c0_i32, %c0_i32_0 : i32, i32
  }
  func.func @transform_3(%arg0: i32) -> (i32, i32) {
    %c0_i32 = arith.constant 0 : i32
    %c0_i32_0 = arith.constant 0 : i32
    return %arg0, %c0_i32 : i32, i32
  }
}

</mosaic_0001>

<bundles_post_ra>
// kernel: tpu_custom_call.1
= control target key start
LH: loop header
LB: loop body
LE: loop exit
PB: predicated region body
PF: predicated region fallthrough
CT: control target
= control target key end

     0   :  { %8 = vsyncpa [#allocation3], 0  ;;  %s603_s0 = inlined_call_operand.hbm [shape: f32[8,128], index: 0, kind: input, shape index: {}]   ;;  %s604_s1 = inlined_call_operand.hbm [shape: f32[40,128], index: 1, kind: input, shape index: {}]   ;;  %s605_s2 = inlined_call_operand.hbm [shape: f32[8,128], index: 2, kind: input, shape index: {}]   ;;  %s606_s3 = inlined_call_operand.hbm [shape: f32[8,128], index: 3, kind: output, shape index: {}]  }
   0x1   :  { %9 = vsyncpa [#allocation6], 0 }
   0x2   :  { %10 = vsyncpa [#allocation4], 0  ;;  %s501_s12 = smov [#allocation5]   ;;  %s407_s16 = scalar_lea.hbm %s604_s1, 640 }
   0x3   :  { %s26_s13 = sshll.u32 %s501_s12, 4  ;;  %p408_p0 = scmp.ne.s32.totalorder %s604_s1, %s407_s16  ;;  %s27_s13 = int_to_ptr.vmem [resolvable:$true] %s26_s13 }
   0x4   :  { %p411_p1 = scmp.lt.u32.totalorder %s407_s16, %s604_s1 }
   0x6   :  { %p413_p2 = pnand %p411_p1, %p408_p0 }
   0x8   :  { %416 = shalt.err (!%p413_p2)
}
   0x9   :  { %s417_s21 = scalar_lea.vmem %s27_s13, 640  ;;  %p422_p4 = scmp.lt.s32.totalorder %s27_s13, %s27_s13 }
   0xa   :  { %p418_p3 = scmp.ne.s32.totalorder %s27_s13, %s417_s21  ;;  %p423_p5 = scmp.lt.s32.totalorder %s417_s21, %s417_s21 }
   0xc   :  { %p424_p6 = por %p423_p5, %p422_p4 }
   0xe   :  { %p425_p7 = pnand %p424_p6, %p418_p3 }
  0x10   :  { %428 = shalt.err (!%p425_p7)
}
  0x11   :  { %s502_s22 = smov 128   ;;  %s503_s23 = smov 8  }
  0x12   :  { %32 = dma.hbm_to_vmem [thread:$0]  %s604_s1, 640, %s27_s13, [#allocation6], %s502_s22, %s502_s22, %s503_s23  }
  0x13   :  { %s504_s26 = smov [#allocation2]   ;;  %s505_s28 = smov [#allocation7]  }
  0x14   :  { %s17_s27 = sshll.u32 %s504_s26, 4  ;;  %s39_s29 = sshll.u32 %s505_s28, 4  ;;  %s18_s27 = int_to_ptr.vmem [resolvable:$true] %s17_s27  ;;  %s40_s29 = int_to_ptr.vmem [resolvable:$true] %s39_s29 }
  0x15   :  { %s429_s5 = scalar_lea.hbm %s603_s0, 128 }
  0x16   :  { %p430_p8 = scmp.ne.s32.totalorder %s603_s0, %s429_s5  ;;  %p433_p9 = scmp.lt.u32.totalorder %s429_s5, %s603_s0 }
  0x18   :  { %p435_p10 = pnand %p433_p9, %p430_p8 }
  0x1a   :  { %438 = shalt.err (!%p435_p10)
}
  0x1b   :  { %s439_s1 = scalar_lea.vmem %s18_s27, 128  ;;  %p444_p12 = scmp.lt.s32.totalorder %s18_s27, %s18_s27 }
  0x1c   :  { %p440_p11 = scmp.ne.s32.totalorder %s18_s27, %s439_s1  ;;  %p445_p13 = scmp.lt.s32.totalorder %s439_s1, %s439_s1 }
  0x1e   :  { %p446_p0 = por %p445_p13, %p444_p12 }
  0x20   :  { %p447_p1 = pnand %p446_p0, %p440_p11 }
  0x22   :  { %450 = shalt.err (!%p447_p1)
}
  0x23   :  { %20 = dma.hbm_to_vmem [thread:$0]  %s603_s0, 128, %s18_s27, [#allocation3]  }
  0x24   :  { %s451_s14 = scalar_lea.hbm %s605_s2, 128 }
  0x25   :  { %p452_p2 = scmp.ne.s32.totalorder %s605_s2, %s451_s14  ;;  %p455_p3 = scmp.lt.u32.totalorder %s451_s14, %s605_s2 }
  0x27   :  { %p457_p4 = pnand %p455_p3, %p452_p2 }
  0x29   :  { %460 = shalt.err (!%p457_p4)
}
  0x2a   :  { %s461_s19 = scalar_lea.vmem %s40_s29, 128  ;;  %p466_p6 = scmp.lt.s32.totalorder %s40_s29, %s40_s29 }
  0x2b   :  { %p462_p5 = scmp.ne.s32.totalorder %s40_s29, %s461_s19  ;;  %p467_p7 = scmp.lt.s32.totalorder %s461_s19, %s461_s19 }
  0x2d   :  { %p468_p8 = por %p467_p7, %p466_p6 }
  0x2f   :  { %p469_p9 = pnand %p468_p8, %p462_p5 }
  0x31   :  { %472 = shalt.err (!%p469_p9)
}
  0x32   :  { %42 = dma.hbm_to_vmem [thread:$0]  %s605_s2, 128, %s40_s29, [#allocation6]  }
  0x33   :  { %495 = dma.done.wait [#allocation3], 128  }
  0x34   :  { %496 = vsyncadd [#allocation3], 4294967168 }
  0x35   :  { %497 = dma.done.wait [#allocation6], 768  }
  0x36   :  { %498 = vsyncadd [#allocation6], 4294966528  ;;  %v506_v0 = vmov 0   ;;  %v52_v1 = vld [vmem:[#allocation2] sm:$0xff]  ;;  %v507_v2 = vmov 1   ;;  %v508_v3 = vmov 3  }
  0x37   :  { %384 = vset.pattern.permute.xlu0 %v506_v0  ;;  %386 = vset.pattern.permute.xlu1 %v506_v0  ;;  %v346_v5 = vld [vmem:[#allocation5] ss:$0 sm:$0xff]  ;;  %v347_v6 = vld [vmem:[#allocation5 + $0x1] ss:$0 sm:$0xff]  ;;  %v348_v10 = vld [vmem:[#allocation7] ss:$0 sm:$0xff] }
  0x38   :  { %56 = vperm.xlu0 %384, %v52_v1   ;;  %v509_v14 = vmov 2   ;;  %v510_v15 = vmov 4   ;;  %v350_v17 = vld [vmem:[#allocation5 + $0x9] ss:$0 sm:$0xff]  ;;  %v349_v19 = vld [vmem:[#allocation5 + $0x8] ss:$0 sm:$0xff] }
  0x39   :  { %v351_v21 = vld [vmem:[#allocation5 + $0xa] ss:$0 sm:$0xff]  ;;  %v352_v23 = vld [vmem:[#allocation5 + $0xb] ss:$0 sm:$0xff]  ;;  %v353_v30 = vld [vmem:[#allocation5 + $0xc] ss:$0 sm:$0xff] }
  0x3a   :  { %v354_v34 = vld [vmem:[#allocation7 + $0x1] ss:$0 sm:$0xff]  ;;  %v356_v39 = vld [vmem:[#allocation5 + $0x11] ss:$0 sm:$0xff]  ;;  %v355_v41 = vld [vmem:[#allocation5 + $0x10] ss:$0 sm:$0xff] }
  0x3b   :  { %v357_v42 = vld [vmem:[#allocation5 + $0x12] ss:$0 sm:$0xff]  ;;  %v358_v47 = vld [vmem:[#allocation5 + $0x13] ss:$0 sm:$0xff]  ;;  %v359_v49 = vld [vmem:[#allocation5 + $0x14] ss:$0 sm:$0xff] }
  0x3c   :  { %385 = vset.pattern.permute.xlu0 %v507_v2  ;;  %v360_v56 = vld [vmem:[#allocation7 + $0x2] ss:$0 sm:$0xff]  ;;  %v361_v61 = vld [vmem:[#allocation5 + $0x18] ss:$0 sm:$0xff]  ;;  %v362_v62 = vld [vmem:[#allocation5 + $0x19] ss:$0 sm:$0xff] }
  0x3d   :  { %66 = vperm.xlu0 %385, %v52_v1   ;;  %s511_s2 = smov [#allocation8]  }
  0x3e   :  { %s336_s21 = sshll.u32 %s511_s2, 4  ;;  %s337_s21 = int_to_ptr.vmem [resolvable:$true] %s336_s21 }
  0x3f   :  { %s473_s22 = scalar_lea.vmem %s337_s21, 128  ;;  %p478_p11 = scmp.lt.s32.totalorder %s337_s21, %s337_s21 }
  0x40   :  { %p474_p10 = scmp.ne.s32.totalorder %s337_s21, %s473_s22  ;;  %p479_p12 = scmp.lt.s32.totalorder %s473_s22, %s473_s22 }
  0x41   :  { %389 = vset.pattern.permute.xlu0 %v508_v3 }
  0x42   :  { %p480_p13 = por %p479_p12, %p478_p11 }
  0x44   :  { %p481_p0 = pnand %p480_p13, %p474_p10 }
  0xb7   :  { %v57_v4 = vpop.permute.xlu0 %56 }
  0xb8   :  { %v63_v8 = vmul.f32 %v346_v5, %v57_v4  ;;  %v363_v5 = vld [vmem:[#allocation5 + $0x1a] ss:$0 sm:$0xff] }
  0xbc   :  { %v67_v7 = vpop.permute.xlu0 %66 }
  0xbd   :  { %v73_v9 = vmul.f32 %v347_v6, %v67_v7 }
  0xbf   :  { %v74_v11 = vadd.f32 %v73_v9, %v63_v8  ;;  %v364_v8 = vld [vmem:[#allocation5 + $0x1b] ss:$0 sm:$0xff] }
  0xc1   :  { %v80_v12 = vadd.f32 %v348_v10, %v74_v11 }
  0xc3   :  { %v81_v13 = vmax.f32 %v80_v12, 0.0  ;;  %v365_v12 = vld [vmem:[#allocation5 + $0x1c] ss:$0 sm:$0xff] }
  0xc5   :  { %117 = vperm.xlu0 %389, %v81_v13   ;;  %85 = vperm.xlu1 %386, %v81_v13  }
  0xc9   :  { %387 = vset.pattern.permute.xlu1 %v507_v2  ;;  %392 = vset.pattern.permute.xlu0 %v507_v2 }
  0xca   :  { %95 = vperm.xlu1 %387, %v81_v13  }
  0xce   :  { %388 = vset.pattern.permute.xlu1 %v509_v14 }
  0xcf   :  { %106 = vperm.xlu1 %388, %v81_v13  }
  0xd3   :  { %390 = vset.pattern.permute.xlu1 %v510_v15 }
  0xd4   :  { %128 = vperm.xlu1 %390, %v81_v13  }
  0xd8   :  { %391 = vset.pattern.permute.xlu1 %v506_v0 }
 0x144   :  { %v86_v16 = vpop.permute.xlu1 %85  ;;  %v118_v24 = vpop.permute.xlu0 %117 }
 0x145   :  { %v92_v22 = vmul.f32 %v349_v19, %v86_v16  ;;  %v124_v28 = vmul.f32 %v352_v23, %v118_v24 }
 0x149   :  { %v96_v18 = vpop.permute.xlu1 %95 }
 0x14a   :  { %v102_v20 = vmul.f32 %v350_v17, %v96_v18  ;;  %v366_v18 = vld [vmem:[#allocation7 + $0x3] ss:$0 sm:$0xff] }
 0x14c   :  { %v103_v26 = vadd.f32 %v102_v20, %v92_v22  ;;  %v367_v22 = vld [vmem:[#allocation5 + $0x20] ss:$0 sm:$0xff] }
 0x14e   :  { %v107_v25 = vpop.permute.xlu1 %106 }
 0x14f   :  { %v113_v27 = vmul.f32 %v351_v21, %v107_v25  ;;  %v368_v21 = vld [vmem:[#allocation5 + $0x21] ss:$0 sm:$0xff] }
 0x151   :  { %v114_v29 = vadd.f32 %v113_v27, %v103_v26  ;;  %v369_v27 = vld [vmem:[#allocation5 + $0x22] ss:$0 sm:$0xff] }
 0x153   :  { %v125_v31 = vadd.f32 %v124_v28, %v114_v29  ;;  %v129_v32 = vpop.permute.xlu1 %128  ;;  %v370_v29 = vld [vmem:[#allocation5 + $0x23] ss:$0 sm:$0xff] }
 0x154   :  { %v135_v33 = vmul.f32 %v353_v30, %v129_v32 }
 0x156   :  { %v136_v35 = vadd.f32 %v135_v33, %v125_v31  ;;  %v371_v33 = vld [vmem:[#allocation5 + $0x24] ss:$0 sm:$0xff] }
 0x158   :  { %v142_v36 = vadd.f32 %v354_v34, %v136_v35 }
 0x15a   :  { %v143_v37 = vmax.f32 %v142_v36, 0.0 }
 0x15c   :  { %157 = vperm.xlu0 %392, %v143_v37   ;;  %147 = vperm.xlu1 %391, %v143_v37  }
 0x160   :  { %395 = vset.pattern.permute.xlu0 %v510_v15  ;;  %393 = vset.pattern.permute.xlu1 %v509_v14 }
 0x161   :  { %190 = vperm.xlu0 %395, %v143_v37   ;;  %168 = vperm.xlu1 %393, %v143_v37  }
 0x165   :  { %394 = vset.pattern.permute.xlu1 %v508_v3  ;;  %398 = vset.pattern.permute.xlu0 %v509_v14 }
 0x166   :  { %179 = vperm.xlu1 %394, %v143_v37  }
 0x16a   :  { %396 = vset.pattern.permute.xlu1 %v506_v0 }
 0x1db   :  { %v148_v38 = vpop.permute.xlu1 %147  ;;  %v158_v40 = vpop.permute.xlu0 %157 }
 0x1dc   :  { %v164_v43 = vmul.f32 %v356_v39, %v158_v40  ;;  %v154_v44 = vmul.f32 %v355_v41, %v148_v38 }
 0x1de   :  { %v165_v48 = vadd.f32 %v164_v43, %v154_v44 }
 0x1e0   :  { %v169_v45 = vpop.permute.xlu1 %168  ;;  %v191_v50 = vpop.permute.xlu0 %190 }
 0x1e1   :  { %v175_v46 = vmul.f32 %v357_v42, %v169_v45  ;;  %v197_v54 = vmul.f32 %v359_v49, %v191_v50 }
 0x1e3   :  { %v176_v52 = vadd.f32 %v175_v46, %v165_v48 }
 0x1e5   :  { %v180_v51 = vpop.permute.xlu1 %179 }
 0x1e6   :  { %v186_v53 = vmul.f32 %v358_v47, %v180_v51 }
 0x1e8   :  { %v187_v55 = vadd.f32 %v186_v53, %v176_v52 }
 0x1ea   :  { %v198_v57 = vadd.f32 %v197_v54, %v187_v55 }
 0x1ec   :  { %v204_v58 = vadd.f32 %v360_v56, %v198_v57 }
 0x1ee   :  { %v205_v59 = vmax.f32 %v204_v58, 0.0 }
 0x1f0   :  { %230 = vperm.xlu0 %398, %v205_v59   ;;  %209 = vperm.xlu1 %396, %v205_v59  }
 0x1f4   :  { %397 = vset.pattern.permute.xlu1 %v507_v2  ;;  %401 = vset.pattern.permute.xlu0 %v506_v0 }
 0x1f5   :  { %219 = vperm.xlu1 %397, %v205_v59  }
 0x1f9   :  { %399 = vset.pattern.permute.xlu1 %v508_v3 }
 0x1fa   :  { %241 = vperm.xlu1 %399, %v205_v59  }
 0x1fe   :  { %400 = vset.pattern.permute.xlu1 %v510_v15 }
 0x1ff   :  { %252 = vperm.xlu1 %400, %v205_v59  }
 0x203   :  { %402 = vset.pattern.permute.xlu1 %v507_v2 }
 0x26f   :  { %v210_v60 = vpop.permute.xlu1 %209  ;;  %v231_v6 = vpop.permute.xlu0 %230 }
 0x270   :  { %v216_v1 = vmul.f32 %v361_v61, %v210_v60  ;;  %v237_v0 = vmul.f32 %v363_v5, %v231_v6 }
 0x274   :  { %v220_v63 = vpop.permute.xlu1 %219 }
 0x275   :  { %v226_v4 = vmul.f32 %v362_v62, %v220_v63 }
 0x277   :  { %v227_v7 = vadd.f32 %v226_v4, %v216_v1 }
 0x279   :  { %v242_v9 = vpop.permute.xlu1 %241  ;;  %v238_v10 = vadd.f32 %v237_v0, %v227_v7 }
 0x27a   :  { %v248_v11 = vmul.f32 %v364_v8, %v242_v9 }
 0x27c   :  { %v249_v16 = vadd.f32 %v248_v11, %v238_v10 }
 0x27e   :  { %v253_v13 = vpop.permute.xlu1 %252 }
 0x27f   :  { %v259_v17 = vmul.f32 %v365_v12, %v253_v13 }
 0x281   :  { %v260_v2 = vadd.f32 %v259_v17, %v249_v16 }
 0x283   :  { %v266_v19 = vadd.f32 %v366_v18, %v260_v2 }
 0x285   :  { %v267_v20 = vmax.f32 %v266_v19, 0.0 }
 0x287   :  { %281 = vperm.xlu1 %402, %v267_v20   ;;  %271 = vperm.xlu0 %401, %v267_v20  }
 0x28b   :  { %403 = vset.pattern.permute.xlu1 %v509_v14  ;;  %404 = vset.pattern.permute.xlu0 %v508_v3 }
 0x28c   :  { %292 = vperm.xlu1 %403, %v267_v20   ;;  %303 = vperm.xlu0 %404, %v267_v20  }
 0x290   :  { %405 = vset.pattern.permute.xlu1 %v510_v15  ;;  %406 = vset.pattern.permute.xlu0 %v510_v15  ;;  %v372_v15 = vld [vmem:[#allocation7 + $0x4] ss:$0 sm:$0xff] }
 0x291   :  { %314 = vperm.xlu1 %405, %v267_v20  }
 0x306   :  { %v282_v23 = vpop.permute.xlu1 %281  ;;  %v272_v24 = vpop.permute.xlu0 %271 }
 0x307   :  { %v288_v25 = vmul.f32 %v368_v21, %v282_v23  ;;  %v278_v26 = vmul.f32 %v367_v22, %v272_v24 }
 0x309   :  { %v289_v14 = vadd.f32 %v288_v25, %v278_v26 }
 0x30b   :  { %v293_v28 = vpop.permute.xlu1 %292  ;;  %v304_v30 = vpop.permute.xlu0 %303 }
 0x30c   :  { %v299_v31 = vmul.f32 %v369_v27, %v293_v28  ;;  %v310_v32 = vmul.f32 %v370_v29, %v304_v30 }
 0x30e   :  { %v300_v3 = vadd.f32 %v299_v31, %v289_v14 }
 0x310   :  { %v311_v34 = vadd.f32 %v310_v32, %v300_v3  ;;  %v315_v35 = vpop.permute.xlu1 %314 }
 0x311   :  { %v321_v36 = vmul.f32 %v371_v33, %v315_v35 }
 0x313   :  { %v322_v37 = vadd.f32 %v321_v36, %v311_v34 }
 0x315   :  { %v328_v38 = vadd.f32 %v372_v15, %v322_v37 }
 0x317   :  { %329 = vst [vmem:[#allocation8] sm:$0xff] %v328_v38 }
 0x318   :  { %484 = shalt.err (!%p481_p0)
}
 0x319   :  { %s485_s25 = scalar_lea.hbm %s606_s3, 128 }
 0x31a   :  { %p486_p1 = scmp.ne.s32.totalorder %s606_s3, %s485_s25  ;;  %p489_p2 = scmp.lt.u32.totalorder %s485_s25, %s606_s3 }
 0x31c   :  { %p491_p3 = pnand %p489_p2, %p486_p1 }
 0x31e   :  { %494 = shalt.err (!%p491_p3)
}
 0x31f   :  { %339 = dma.vmem_to_hbm [thread:$0]  %s337_s21, 128, %s606_s3, [#allocation4]  }
 0x320   :  { %499 = dma.done.wait [#allocation4], 128  }
 0x321   :  { %500 = vsyncadd [#allocation4], 4294967168 }
 0x322   :  { %343 = vsyncpa [#allocation3], 1 }
 0x323   :  { %344 = vsyncpa [#allocation6], 1 }
 0x324   :  { %345 = vsyncpa [#allocation4], 1 }

</bundles_post_ra>
